<compile_context>
chip_gen: v7x
topology: tpu7x:2x2x1
jax: 0.10.0
libtpu: 0.0.40
codegen_flags: <defaults>
</compile_context>

<pallas_src>
import functools
from typing import NamedTuple

import jax
import jax.numpy as jnp
from jax.experimental import pallas as pl
from jax.experimental.pallas import tpu as pltpu


def _round_up(n, m):
    return ((n + m - 1) // m) * m


def _pad2d(a, rows, cols):
    return jnp.pad(a, ((0, rows - a.shape[0]), (0, cols - a.shape[1])))


# ----------------------------------------------------------------------------
# One-time feature probe (instead of a broad try/except around the real call):
# does this jax build accept pipeline_mode=pl.Buffered(1) on BlockSpec?
def _probe_pipeline_mode():
    try:
        pl.BlockSpec((8, 128), lambda i: (0, 0), pipeline_mode=pl.Buffered(1))
        return True
    except Exception:
        return False


_PIPELINE_MODE_OK = _probe_pipeline_mode()


def _vmem_budget_bytes():
    """Per-core VMEM budget: physical capacity minus headroom, generation aware
    (v5e/v6e: 128 MiB -> ~112 MiB budget; v7x: 64 MiB/TC -> ~48 MiB budget)."""
    try:
        cap = int(pltpu.get_tpu_info().vmem_capacity_bytes)
    except Exception:
        cap = 64 * 1024 * 1024  # conservative fallback (v7x per-TC)
    return max(32 * 1024 * 1024, cap - 16 * 1024 * 1024)


def _fused_vmem_estimate(tile_m, in_p, out_p, x_itemsize, w_itemsize, weight_bufs):
    # Weights/biases use the *weight* dtype's itemsize (may differ from x).
    weight_bytes = weight_bufs * w_itemsize * (
        2 * in_p * in_p + in_p * out_p + 2 * in_p + out_p)
    # Double-buffered x / out batch tiles.
    io_bytes = 2 * x_itemsize * tile_m * (in_p + out_p)
    # f32 intermediates that live through the kernel plus their recasts.
    scratch_bytes = 4 * tile_m * (2 * in_p + out_p) + w_itemsize * tile_m * in_p
    return weight_bytes + io_bytes + scratch_bytes


# ----------------------------------------------------------------------------
# Path 1: fully fused MLP, whole weights VMEM-resident.
def fused_pred_block_kernel(x_ref, w1_ref, b1_ref, w2_ref, b2_ref, w3_ref, b3_ref,
                            o_ref):
    """Fused MLP: (x @ W1 + b1) -> SiLU -> (@ W2 + b2) -> (@ W3 + b3)."""
    # Cast activations to the weight dtype so bf16 weights run at full MXU rate
    # (no-op for f32 weights).  Accumulation stays f32 via preferred_element_type.
    x = x_ref[...].astype(w1_ref.dtype)

    h = jnp.dot(x, w1_ref[...], preferred_element_type=jnp.float32)
    h = h + b1_ref[...].astype(jnp.float32)

    # SiLU in f32 (sigmoid goes to the EUP slot; hidden under MXU work; safe on
    # v5e which has no bf16 VPU/EUP path).
    h = h * jax.nn.sigmoid(h)
    h = h.astype(w2_ref.dtype)

    h = jnp.dot(h, w2_ref[...], preferred_element_type=jnp.float32)
    h = h + b2_ref[...].astype(jnp.float32)
    h = h.astype(w3_ref.dtype)

    o = jnp.dot(h, w3_ref[...], preferred_element_type=jnp.float32)
    o = o + b3_ref[...].astype(jnp.float32)
    o_ref[...] = o.astype(o_ref.dtype)


def _fused_call(tile_m, b_pad, in_p, out_p, out_dtype, vmem_limit):
    # TODO(synk): verify in the Mosaic dump that the constant-index weights are
    # DMA'd exactly once; if re-fetched per step, switch to memory_space=pl.ANY
    # plus one explicit make_async_copy into VMEM scratch under pl.when(i == 0).
    def const_spec(shape):
        if _PIPELINE_MODE_OK:
            return pl.BlockSpec(shape, lambda i: (0, 0), pipeline_mode=pl.Buffered(1))
        return pl.BlockSpec(shape, lambda i: (0, 0))

    grid_spec = pltpu.PrefetchScalarGridSpec(
        num_scalar_prefetch=0,
        grid=(b_pad // tile_m,),
        in_specs=[
            pl.BlockSpec((tile_m, in_p), lambda i: (i, 0)),   # x tile over batch rows
            const_spec((in_p, in_p)),    # W1
            const_spec((1, in_p)),       # b1
            const_spec((in_p, in_p)),    # W2
            const_spec((1, in_p)),       # b2
            const_spec((in_p, out_p)),   # W3
            const_spec((1, out_p)),      # b3
        ],
        out_specs=pl.BlockSpec((tile_m, out_p), lambda i: (i, 0)),
    )
    return pl.pallas_call(
        fused_pred_block_kernel,
        out_shape=jax.ShapeDtypeStruct((b_pad, out_p), out_dtype),
        grid_spec=grid_spec,
        compiler_params=pltpu.CompilerParams(
            dimension_semantics=("parallel",),   # batch steps shard across v7x's 2 TCs
            vmem_limit_bytes=int(vmem_limit),
        ),
    )


# ----------------------------------------------------------------------------
# Path 2: K/N-tiled single Linear (optionally fused SiLU) with f32 accumulator.
def _tiled_linear_kernel(x_ref, w_ref, b_ref, o_ref, acc_ref, *, apply_silu):
    k = pl.program_id(2)

    @pl.when(k == 0)
    def _():
        acc_ref[...] = jnp.zeros_like(acc_ref)

    acc_ref[...] += jnp.dot(x_ref[...].astype(w_ref.dtype), w_ref[...],
                            preferred_element_type=jnp.float32)

    @pl.when(k == pl.num_programs(2) - 1)
    def _():
        y = acc_ref[...] + b_ref[...].astype(jnp.float32)
        if apply_silu:
            y = y * jax.nn.sigmoid(y)
        o_ref[...] = y.astype(o_ref.dtype)


def _pick_feature_tile(dim, pref):
    """Largest tile <= pref that divides dim (dim is a multiple of 128)."""
    t = min(pref, dim)
    while dim % t:
        t -= 128
    return t


def _tiled_linear(x, w, b, *, apply_silu, out_dtype, tile_m, tile_n, tile_k,
                  vmem_limit):
    M, K = x.shape
    _, N = w.shape
    kernel = functools.partial(_tiled_linear_kernel, apply_silu=apply_silu)
    return pl.pallas_call(
        kernel,
        out_shape=jax.ShapeDtypeStruct((M, N), out_dtype),
        grid_spec=pltpu.PrefetchScalarGridSpec(
            num_scalar_prefetch=0,
            grid=(M // tile_m, N // tile_n, K // tile_k),
            in_specs=[
                pl.BlockSpec((tile_m, tile_k), lambda i, j, k: (i, k)),
                pl.BlockSpec((tile_k, tile_n), lambda i, j, k: (k, j)),
                pl.BlockSpec((1, tile_n), lambda i, j, k: (0, j)),
            ],
            out_specs=pl.BlockSpec((tile_m, tile_n), lambda i, j, k: (i, j)),
            scratch_shapes=[pltpu.VMEM((tile_m, tile_n), jnp.float32)],
        ),
        compiler_params=pltpu.CompilerParams(
            dimension_semantics=("parallel", "parallel", "arbitrary"),
            vmem_limit_bytes=int(vmem_limit),
        ),
    )(x, w, b)


# ----------------------------------------------------------------------------
# Parameter handling.
class PredBlockParams(NamedTuple):
    w1: jax.Array   # [in_p, in_p]
    b1: jax.Array   # [1, in_p]
    w2: jax.Array   # [in_p, in_p]
    b2: jax.Array   # [1, in_p]
    w3: jax.Array   # [in_p, out_p]
    b3: jax.Array   # [1, out_p]
    in_dim: int
    out_dim: int


def prepare_pred_block_params(w1, b1, w2, b2, w3, b3, *, compute_dtype=None):
    """One-time padding/casting of parameters (off the per-call path).

    Weights must already be [in, out] (transposed vs PyTorch).  Feature axes
    are zero-padded to 128-lane multiples (numerically exact: padded lanes
    contribute 0 and padded outputs are sliced off).  compute_dtype=bf16 gives
    the fast MXU path on v6e/v7x (f32 accumulation is kept in-kernel)."""
    in_dim = int(w1.shape[0])
    out_dim = int(w3.shape[1])
    in_p = _round_up(in_dim, 128)
    out_p = _round_up(out_dim, 128)
    dt = jnp.dtype(compute_dtype) if compute_dtype is not None else jnp.asarray(w1).dtype

    w1p = _pad2d(jnp.asarray(w1, dt), in_p, in_p)
    w2p = _pad2d(jnp.asarray(w2, dt), in_p, in_p)
    w3p = _pad2d(jnp.asarray(w3, dt), in_p, out_p)
    b1p = _pad2d(jnp.reshape(jnp.asarray(b1, dt), (1, -1)), 1, in_p)
    b2p = _pad2d(jnp.reshape(jnp.asarray(b2, dt), (1, -1)), 1, in_p)
    b3p = _pad2d(jnp.reshape(jnp.asarray(b3, dt), (1, -1)), 1, out_p)
    return PredBlockParams(w1p, b1p, w2p, b2p, w3p, b3p, in_dim, out_dim)


def pred_block(x, params: PredBlockParams, *, tile_m=256, force_tiled=False):
    """x: [B, in_dim]; params: prepared (padded) PredBlockParams."""
    B, in_dim = x.shape
    assert in_dim == params.in_dim, "x feature dim does not match params"
    in_p = params.w1.shape[0]
    out_p = params.w3.shape[1]

    # Batch tiling: big M tiles for MXU utilization, multiples of 8 (sublanes),
    # never padded past a single tile for tiny batches, and split so the grid
    # has >= 2 steps whenever the batch allows (keeps v7x's 2nd TC busy).
    rows = _round_up(max(B, 1), 8)
    tile_m = max(8, min(tile_m, rows))
    if rows >= 16 and tile_m >= rows:
        tile_m = _round_up(-(-rows // 2), 8)
    b_pad = _round_up(B, tile_m)

    x_p = _pad2d(x, b_pad, in_p)   # per-call x padding only; weights pre-padded

    x_itemsize = jnp.dtype(x.dtype).itemsize
    w_itemsize = jnp.dtype(params.w1.dtype).itemsize
    budget = _vmem_budget_bytes()
    fused_est = _fused_vmem_estimate(
        tile_m, in_p, out_p, x_itemsize, w_itemsize,
        weight_bufs=1 if _PIPELINE_MODE_OK else 2)

    if not force_tiled and fused_est <= budget:
        vmem_limit = min(budget, max(32 * 1024 * 1024, 2 * fused_est))
        out = _fused_call(tile_m, b_pad, in_p, out_p, x.dtype, vmem_limit)(
            x_p, params.w1, params.b1, params.w2, params.b2, params.w3, params.b3)
    else:
        # Weights too large for whole-weight residency: per-layer K/N-tiled
        # matmuls with f32 accumulators.  Intermediates round-trip HBM, which
        # is acceptable in this weight-dominated regime.
        tile_n_h = _pick_feature_tile(in_p, 512)
        tile_n_o = _pick_feature_tile(out_p, 512)
        tile_k = _pick_feature_tile(in_p, 512)
        wdt = params.w1.dtype
        h = _tiled_linear(x_p, params.w1, params.b1, apply_silu=True, out_dtype=wdt,
                          tile_m=tile_m, tile_n=tile_n_h, tile_k=tile_k,
                          vmem_limit=budget)
        h = _tiled_linear(h, params.w2, params.b2, apply_silu=False, out_dtype=wdt,
                          tile_m=tile_m, tile_n=tile_n_h, tile_k=tile_k,
                          vmem_limit=budget)
        out = _tiled_linear(h, params.w3, params.b3, apply_silu=False,
                            out_dtype=x.dtype, tile_m=tile_m, tile_n=tile_n_o,
                            tile_k=tile_k, vmem_limit=budget)

    return out[:B, :params.out_dim]


def init_pred_block_params(key, in_dim, out_dim, dtype=jnp.float32):
    """Match PyTorch init: weight ~ N(0, 0.001), bias = 0.
    Returned weights are already transposed to [in, out]."""
    k1, k2, k3 = jax.random.split(key, 3)
    w1 = (jax.random.normal(k1, (in_dim, in_dim), dtype) * 0.001).T
    w2 = (jax.random.normal(k2, (in_dim, in_dim), dtype) * 0.001).T
    w3 = (jax.random.normal(k3, (out_dim, in_dim), dtype) * 0.001).T
    b1 = jnp.zeros((1, in_dim), dtype)
    b2 = jnp.zeros((1, in_dim), dtype)
    b3 = jnp.zeros((1, out_dim), dtype)
    return w1, b1, w2, b2, w3, b3


def pred_block_ref(x, w1, b1, w2, b2, w3, b3):
    h = x @ w1 + b1
    h = h * jax.nn.sigmoid(h)
    h = h @ w2 + b2
    return h @ w3 + b3


if __name__ == "__main__":
    key = jax.random.PRNGKey(0)
    kx, kp = jax.random.split(key)

    batch, in_dim, out_dim = 16, 32, 16
    x = jax.random.normal(kx, (batch, in_dim), jnp.float32)
    raw = init_pred_block_params(kp, in_dim, out_dim)
    prepared = prepare_pred_block_params(*raw)   # pad/cast once, off the hot path

    # Fused (whole-weight-resident) path.
    out = jax.block_until_ready(pred_block(x, prepared))
    # Also exercise the K/N-tiled fallback path so it is known to compile.
    out_tiled = jax.block_until_ready(pred_block(x, prepared, force_tiled=True))

    ref = pred_block_ref(x, *raw)
    assert out.shape == (batch, out_dim)
    assert jnp.allclose(out, ref, atol=1e-5, rtol=1e-5)
    assert jnp.allclose(out_tiled, ref, atol=1e-5, rtol=1e-5)

    print("KERNEL_OK")
</pallas_src>

<mosaic_0001>
module attributes {stable_mosaic.version = 11 : i64} {
  func.func @fused_pred_block_kernel(%arg0: i32, %arg1: memref<8x128xf32, #tpu.memory_space<vmem>>, %arg2: memref<128x128xf32, #tpu.memory_space<vmem>>, %arg3: memref<1x128xf32, #tpu.memory_space<vmem>>, %arg4: memref<128x128xf32, #tpu.memory_space<vmem>>, %arg5: memref<1x128xf32, #tpu.memory_space<vmem>>, %arg6: memref<128x128xf32, #tpu.memory_space<vmem>>, %arg7: memref<1x128xf32, #tpu.memory_space<vmem>>, %arg8: memref<8x128xf32, #tpu.memory_space<vmem>>) attributes {dimension_semantics = [#tpu.dimension_semantics<parallel>], iteration_bounds = array<i64: 2>, scalar_prefetch = 0 : i64, scratch_operands = 0 : i64, tpu.core_type = #tpu.core_type<tc>, window_params = [{transform_indices = @transform_0, window_bounds = array<i64: 8, 128>}, {pipeline_mode = #tpu.pipeline_mode<synchronous>, transform_indices = @transform_1, window_bounds = array<i64: 128, 128>}, {pipeline_mode = #tpu.pipeline_mode<synchronous>, transform_indices = @transform_2, window_bounds = array<i64: 1, 128>}, {pipeline_mode = #tpu.pipeline_mode<synchronous>, transform_indices = @transform_3, window_bounds = array<i64: 128, 128>}, {pipeline_mode = #tpu.pipeline_mode<synchronous>, transform_indices = @transform_4, window_bounds = array<i64: 1, 128>}, {pipeline_mode = #tpu.pipeline_mode<synchronous>, transform_indices = @transform_5, window_bounds = array<i64: 128, 128>}, {pipeline_mode = #tpu.pipeline_mode<synchronous>, transform_indices = @transform_6, window_bounds = array<i64: 1, 128>}, {transform_indices = @transform_7, window_bounds = array<i64: 8, 128>}]} {
    %c0 = arith.constant 0 : index
    %c0_0 = arith.constant 0 : index
    %0 = vector.load %arg1[%c0, %c0_0] : memref<8x128xf32, #tpu.memory_space<vmem>>, vector<8x128xf32>
    %c0_1 = arith.constant 0 : index
    %c0_2 = arith.constant 0 : index
    %1 = vector.load %arg2[%c0_1, %c0_2] : memref<128x128xf32, #tpu.memory_space<vmem>>, vector<128x128xf32>
    %cst = arith.constant dense<0.000000e+00> : vector<8x128xf32>
    %2 = tpu.matmul %0, %1, %cst {dimension_numbers = #tpu.dot_dimension_numbers<[1], [0], [0], [1], [0, 0, 1, 1], [], []>} : vector<8x128xf32>, vector<128x128xf32>, vector<8x128xf32> -> vector<8x128xf32>
    %c0_3 = arith.constant 0 : index
    %c0_4 = arith.constant 0 : index
    %3 = vector.load %arg3[%c0_3, %c0_4] : memref<1x128xf32, #tpu.memory_space<vmem>>, vector<1x128xf32>
    %4 = vector.broadcast %3 : vector<1x128xf32> to vector<8x128xf32>
    %5 = arith.addf %2, %4 : vector<8x128xf32>
    %6 = arith.negf %5 : vector<8x128xf32>
    %7 = math.exp %6 : vector<8x128xf32>
    %cst_5 = arith.constant 1.000000e+00 : f32
    %8 = vector.broadcast %cst_5 : f32 to vector<8x128xf32>
    %9 = arith.addf %8, %7 : vector<8x128xf32>
    %10 = arith.divf %8, %9 : vector<8x128xf32>
    %11 = arith.mulf %5, %10 : vector<8x128xf32>
    %c0_6 = arith.constant 0 : index
    %c0_7 = arith.constant 0 : index
    %12 = vector.load %arg4[%c0_6, %c0_7] : memref<128x128xf32, #tpu.memory_space<vmem>>, vector<128x128xf32>
    %cst_8 = arith.constant dense<0.000000e+00> : vector<8x128xf32>
    %13 = tpu.matmul %11, %12, %cst_8 {dimension_numbers = #tpu.dot_dimension_numbers<[1], [0], [0], [1], [0, 0, 1, 1], [], []>} : vector<8x128xf32>, vector<128x128xf32>, vector<8x128xf32> -> vector<8x128xf32>
    %c0_9 = arith.constant 0 : index
    %c0_10 = arith.constant 0 : index
    %14 = vector.load %arg5[%c0_9, %c0_10] : memref<1x128xf32, #tpu.memory_space<vmem>>, vector<1x128xf32>
    %15 = vector.broadcast %14 : vector<1x128xf32> to vector<8x128xf32>
    %16 = arith.addf %13, %15 : vector<8x128xf32>
    %c0_11 = arith.constant 0 : index
    %c0_12 = arith.constant 0 : index
    %17 = vector.load %arg6[%c0_11, %c0_12] : memref<128x128xf32, #tpu.memory_space<vmem>>, vector<128x128xf32>
    %cst_13 = arith.constant dense<0.000000e+00> : vector<8x128xf32>
    %18 = tpu.matmul %16, %17, %cst_13 {dimension_numbers = #tpu.dot_dimension_numbers<[1], [0], [0], [1], [0, 0, 1, 1], [], []>} : vector<8x128xf32>, vector<128x128xf32>, vector<8x128xf32> -> vector<8x128xf32>
    %c0_14 = arith.constant 0 : index
    %c0_15 = arith.constant 0 : index
    %19 = vector.load %arg7[%c0_14, %c0_15] : memref<1x128xf32, #tpu.memory_space<vmem>>, vector<1x128xf32>
    %20 = vector.broadcast %19 : vector<1x128xf32> to vector<8x128xf32>
    %21 = arith.addf %18, %20 : vector<8x128xf32>
    %c0_16 = arith.constant 0 : index
    %c0_17 = arith.constant 0 : index
    %22 = vector.load %arg8[%c0_16, %c0_17] : memref<8x128xf32, #tpu.memory_space<vmem>>, vector<8x128xf32>
    tpu.vector_store %arg8[%c0_16, %c0_17], %21 {strides = array<i32>} : memref<8x128xf32, #tpu.memory_space<vmem>>, vector<8x128xf32>,
    return
  }
  func.func @transform_0(%arg0: i32) -> (i32, i32) {
    %c0_i32 = arith.constant 0 : i32
    %c0_i32_0 = arith.constant 0 : i32
    return %arg0, %c0_i32 : i32, i32
  }
  func.func @transform_1(%arg0: i32) -> (i32, i32) {
    %c0_i32 = arith.constant 0 : i32
    %c0_i32_0 = arith.constant 0 : i32
    %c0_i32_1 = arith.constant 0 : i32
    return %c0_i32, %c0_i32_0 : i32, i32
  }
  func.func @transform_2(%arg0: i32) -> (i32, i32) {
    %c0_i32 = arith.constant 0 : i32
    %c0_i32_0 = arith.constant 0 : i32
    %c0_i32_1 = arith.constant 0 : i32
    return %c0_i32, %c0_i32_0 : i32, i32
  }
  func.func @transform_3(%arg0: i32) -> (i32, i32) {
    %c0_i32 = arith.constant 0 : i32
    %c0_i32_0 = arith.constant 0 : i32
    %c0_i32_1 = arith.constant 0 : i32
    return %c0_i32, %c0_i32_0 : i32, i32
  }
  func.func @transform_4(%arg0: i32) -> (i32, i32) {
    %c0_i32 = arith.constant 0 : i32
    %c0_i32_0 = arith.constant 0 : i32
    %c0_i32_1 = arith.constant 0 : i32
    return %c0_i32, %c0_i32_0 : i32, i32
  }
  func.func @transform_5(%arg0: i32) -> (i32, i32) {
    %c0_i32 = arith.constant 0 : i32
    %c0_i32_0 = arith.constant 0 : i32
    %c0_i32_1 = arith.constant 0 : i32
    return %c0_i32, %c0_i32_0 : i32, i32
  }
  func.func @transform_6(%arg0: i32) -> (i32, i32) {
    %c0_i32 = arith.constant 0 : i32
    %c0_i32_0 = arith.constant 0 : i32
    %c0_i32_1 = arith.constant 0 : i32
    return %c0_i32, %c0_i32_0 : i32, i32
  }
  func.func @transform_7(%arg0: i32) -> (i32, i32) {
    %c0_i32 = arith.constant 0 : i32
    %c0_i32_0 = arith.constant 0 : i32
    return %arg0, %c0_i32 : i32, i32
  }
}

</mosaic_0001>

<bundles_post_ra>
// kernel: tpu_custom_call.1
= control target key start
LH: loop header
LB: loop body
LE: loop exit
PB: predicated region body
PF: predicated region fallthrough
CT: control target
= control target key end

     0   :  { %12 = vsyncpa [#allocation3], 0  ;;  %s1621_s0 = inlined_call_operand.hbm [shape: f32[16,128], index: 0, kind: input, shape index: {}]   ;;  %s1622_s1 = inlined_call_operand.hbm [shape: f32[128,128], index: 1, kind: input, shape index: {}]   ;;  %s1623_s2 = inlined_call_operand.vmem [shape: f32[1,128], index: 2, kind: input, shape index: {}]   ;;  %s1624_s3 = inlined_call_operand.hbm [shape: f32[128,128], index: 3, kind: input, shape index: {}]   ;;  %s1625_s4 = inlined_call_operand.vmem [shape: f32[1,128], index: 4, kind: input, shape index: {}]   ;;  %s1626_s5 = inlined_call_operand.hbm [shape: f32[128,128], index: 5, kind: input, shape index: {}]   ;;  %s1627_s6 = inlined_call_operand.vmem [shape: f32[1,128], index: 6, kind: input, shape index: {}]   ;;  %s1628_s7 = inlined_call_operand.hbm [shape: f32[16,128], index: 7, kind: output, shape index: {}]  }
   0x1   :  { %14 = vsyncpa [#allocation3 + $0x1], 0 }
   0x2   :  { %15 = vsyncpa [#allocation6], 0 }
   0x3   :  { %16 = vsyncpa [#allocation9], 0 }
   0x4   :  { %17 = vsyncpa [#allocation4], 0 }
   0x5   :  { %19 = vsyncpa [#allocation4 + $0x1], 0  ;;  %s1315_s24 = smov 0   ;;  %s1317_s25 = smov 0  }
   0x6   :  { %s1319_s26 = smov 0   ;;  %s1321_s27 = smov 0  }
   0x7 LB: > { %s1336_s28 = sadd.s32 4294967295, %s1263_s27   ;;  %s739_s29 = sadd.s32 4294967294, %s1263_s27   ;;  %s1263_s27 = sphi %s1321_s27, %s1654_s27   ;;  %s1259_s26 = sphi %s1319_s26, %s1653_s26   ;;  %s1255_s25 = sphi %s1317_s25, %s1652_s25   ;;  %s1251_s24 = sphi %s1315_s24, %s1651_s24  }
   0x8   : > { %p45_p0 = scmp.ne.s32.totalorder %s1255_s25, %s1251_s24  ;;  %p1629_p1 = scmp.eq.s32.totalorder %s1336_s28, 0 }
   0x9   : > { %p201_p3 = scmp.eq.s32.totalorder %s739_s29, 1  ;;  %p740_p5 = scmp.ge.s32.totalorder %s1263_s27, 1 }
   0xa   : > { %p1345_p4 = por %p1629_p1, %p45_p0  ;;  %p208_p7 = scmp.lt.s32.totalorder %s1263_s27, 3 }
   0xb   : > { %p1350_p6 = por %p201_p3, %p45_p0  ;;  %s1265_s10 = smov [#allocation5]  }
   0xc   : > { %s1633_s30 = scalar_select %p1345_p4, 1, 0 }
   0xd   : > { %s1634_s8 = scalar_select %p1350_p6, 1, 0 }
   0xe   : > { %p1355_p8 = pnand %p740_p5, %p208_p7  ;;  %s220_s11 = sshll.u32 %s1265_s10, 4  ;;  %s1359_s11 = int_to_ptr.vmem [resolvable:$true] %s220_s11 }
   0xf   : > { %1635 = sst [smem:[#allocation15_spill]] %s1634_s8  ;;  %s1266_s13 = smov [#allocation7]  }
  0x10   : > { %s1636_s9 = scalar_select %p1355_p8, 1, 0 }
  0x11   : > { %p1005_p9 = pneg %p1355_p8  ;;  %s236_s14 = sshll.u32 %s1266_s13, 4  ;;  %s1370_s14 = int_to_ptr.vmem [resolvable:$true] %s236_s14 }
  0x12   : > { %s1267_s15 = smov [#allocation8]   ;;  %s1075_s19 = scalar_lea.hbm %s1622_s1, 2048 }
  0x13   : > { %p1366_p11 = pnand %p1005_p9, %p1629_p1  ;;  %s1372_s16 = sshll.u32 %s1267_s15, 4  ;;  %s253_s16 = int_to_ptr.vmem [resolvable:$true] %s1372_s16 }
  0x14   : > { %p1076_p12 = scmp.ne.s32.totalorder %s1622_s1, %s1075_s19  ;;  %p1082_p5 = scmp.lt.u32.totalorder %s1075_s19, %s1622_s1 }
  0x15   : > { %p1382_p13 = pneg %p1366_p11 }
  0x17   : > { %p1078_p0 = pnand %p1382_p13, %p1076_p12 }
  0x19   : > { %p1079_p3 = pneg %p1078_p0 }
  0x1b   : > { %p1084_p7 = pnand %p1082_p5, %p1079_p3 }
  0x1d   : > { %1087 = shalt.err (!%p1084_p7)
}
  0x1e   : > { %s1088_s10 = scalar_lea.vmem %s1359_s11, 2048  ;;  %p1096_p2 = scmp.lt.s32.totalorder %s1359_s11, %s1359_s11 }
  0x1f   : > { %p1089_p9 = scmp.ne.s32.totalorder %s1359_s11, %s1088_s10  ;;  %p1097_p6 = scmp.lt.s32.totalorder %s1088_s10, %s1088_s10 }
  0x21   : > { %p1091_p10 = pnand %p1089_p9, %p1382_p13  ;;  %p1098_p12 = por %p1097_p6, %p1096_p2 }
  0x23   : > { %p1092_p1 = pneg %p1091_p10 }
  0x25   : > { %p1099_p0 = pnand %p1098_p12, %p1092_p1 }
  0x27   : > { %1102 = shalt.err (!%p1099_p0)
}
  0x28   : > { %s1268_s13 = smov 128   ;;  %s1269_s15 = smov 8  }
  0x29   : > { %1008 = dma.hbm_to_vmem [thread:$0]  (!%p1366_p11), %s1622_s1, 2048, %s1359_s11, [#allocation6], %s1268_s13, %s1268_s13, %s1269_s15  }
  0x2a   : > { %s1103_s21 = scalar_lea.hbm %s1624_s3, 2048 }
  0x2b   : > { %p1104_p1 = scmp.ne.s32.totalorder %s1624_s3, %s1103_s21  ;;  %p1110_p10 = scmp.lt.u32.totalorder %s1103_s21, %s1624_s3 }
  0x2d   : > { %p1106_p2 = pnand %p1104_p1, %p1382_p13 }
  0x2f   : > { %p1107_p6 = pneg %p1106_p2 }
  0x31   : > { %p1112_p3 = pnand %p1110_p10, %p1107_p6 }
  0x33   : > { %1115 = shalt.err (!%p1112_p3)
}
  0x34   : > { %s1116_s11 = scalar_lea.vmem %s1370_s14, 2048  ;;  %p1124_p12 = scmp.lt.s32.totalorder %s1370_s14, %s1370_s14 }
  0x35   : > { %p1117_p5 = scmp.ne.s32.totalorder %s1370_s14, %s1116_s11  ;;  %p1125_p0 = scmp.lt.s32.totalorder %s1116_s11, %s1116_s11 }
  0x37   : > { %p1119_p7 = pnand %p1117_p5, %p1382_p13  ;;  %p1126_p1 = por %p1125_p0, %p1124_p12 }
  0x39   : > { %p1120_p9 = pneg %p1119_p7 }
  0x3b   : > { %p1127_p2 = pnand %p1126_p1, %p1120_p9 }
  0x3d   : > { %1130 = shalt.err (!%p1127_p2)
}
  0x3e   : > { %1011 = dma.hbm_to_vmem [thread:$0]  (!%p1366_p11), %s1624_s3, 2048, %s1370_s14, [#allocation6], %s1268_s13, %s1268_s13, %s1269_s15  }
  0x3f   : > { %s1131_s20 = scalar_lea.hbm %s1626_s5, 2048 }
  0x40   : > { %p1132_p6 = scmp.ne.s32.totalorder %s1626_s5, %s1131_s20  ;;  %p1138_p5 = scmp.lt.u32.totalorder %s1131_s20, %s1626_s5 }
  0x42   : > { %p1134_p10 = pnand %p1132_p6, %p1382_p13 }
  0x44   : > { %p1135_p3 = pneg %p1134_p10 }
  0x46   : > { %p1140_p7 = pnand %p1138_p5, %p1135_p3 }
  0x48   : > { %1143 = shalt.err (!%p1140_p7)
}
  0x49   : > { %s1144_s11 = scalar_lea.vmem %s253_s16, 2048  ;;  %p1152_p1 = scmp.lt.s32.totalorder %s253_s16, %s253_s16 }
  0x4a   : > { %p1145_p9 = scmp.ne.s32.totalorder %s253_s16, %s1144_s11  ;;  %p1153_p2 = scmp.lt.s32.totalorder %s1144_s11, %s1144_s11 }
  0x4c   : > { %p1147_p12 = pnand %p1145_p9, %p1382_p13  ;;  %p1154_p4 = por %p1153_p2, %p1152_p1 }
  0x4e   : > { %p1148_p0 = pneg %p1147_p12 }
  0x50   : > { %p1155_p8 = pnand %p1154_p4, %p1148_p0 }
  0x52   : > { %1158 = shalt.err (!%p1155_p8)
}
  0x53   : > { %1014 = dma.hbm_to_vmem [thread:$0]  (!%p1366_p11), %s1626_s5, 2048, %s253_s16, [#allocation9], %s1268_s13, %s1268_s13, %s1269_s15  }
  0x54   : > { %s1455_s22 = sadd.s32 1, %s1263_s27   ;;  %s32_s17 = sadd.s32 1, %s1259_s26 }
  0x55   : > { %s29_s12 = ssub.s32 %s1263_s27, %s1455_s22  ;;  %p39_p8 = scmp.ne.s32.totalorder %s1259_s26, %s1255_s25 }
  0x56   : > { %p30_p4 = scmp.eq.s32.totalorder %s29_s12, 0  ;;  %p40_p13 = scmp.eq.s32.totalorder %s1263_s27, 0 }
  0x57   : > { %p1026_p6 = scmp.lt.s32.totalorder %s1263_s27, 2  ;;  %p1639_p3 = scmp.eq.s32.totalorder %s1336_s28, 1 }
  0x58   : > { %s1465_s18 = scalar_select %p30_p4, %s1259_s26, %s32_s17  }
  0x59   : > { %p41_p10 = por %p40_p13, %p39_p8  ;;  %p1469_p5 = por %p1639_p3, %p39_p8 }
  0x5a   : > { %s269_s20 = sand.u32 1, %s1259_s26   ;;  %s746_s21 = sshll.u32 %s1263_s27, 7 }
  0x5b   : > { %s745_s16 = sshll.u32 %s269_s20, 3  ;;  %s1478_s23 = scalar_lea.hbm %s1621_s0, %s746_s21 }
  0x5c   : > { %s273_s29 = scalar_lea.vmem [#allocation2], %s745_s16  ;;  %p1480_p11 = pnand %p1026_p6, %p41_p10 }
  0x5d   : > { %s280_s10 = sshll.u32 %s273_s29, 4  ;;  %s270_s14 = scalar_lea.sflag [#allocation3], %s269_s20  ;;  %s1484_s10 = int_to_ptr.vmem [resolvable:$true] %s280_s10 }
  0x5e   : > { %s1159_s8 = scalar_lea.hbm %s1478_s23, 128  ;;  %p1161_p9 = pneg %p1480_p11 }
  0x5f   : > { %p1160_p7 = scmp.ne.s32.totalorder %s1478_s23, %s1159_s8  ;;  %s1164_s21 = scalar_lea.hbm %s1621_s0, 256 }
  0x60   : > { %p1165_p1 = scmp.lt.u32.totalorder %s1478_s23, %s1621_s0  ;;  %p1166_p2 = scmp.lt.u32.totalorder %s1164_s21, %s1159_s8 }
  0x61   : > { %p1162_p12 = pnand %p1161_p9, %p1160_p7  ;;  %p1168_p8 = scmp.lt.u32.totalorder %s1159_s8, %s1478_s23 }
  0x62   : > { %p1167_p4 = por %p1166_p2, %p1165_p1 }
  0x63   : > { %p1163_p0 = pneg %p1162_p12 }
  0x64   : > { %p1169_p13 = por %p1168_p8, %p1167_p4 }
  0x66   : > { %p1170_p6 = pnand %p1169_p13, %p1163_p0 }
  0x68   : > { %1173 = shalt.err (!%p1170_p6)
}
  0x69   : > { %s1174_s20 = scalar_lea.vmem %s1484_s10, 128  ;;  %s1270_s15 = smov [#allocation2]  }
  0x6a   : > { %p1175_p10 = scmp.ne.s32.totalorder %s1484_s10, %s1174_s20  ;;  %s1179_s29 = sshll.u32 %s1270_s15, 4  ;;  %s1180_s29 = int_to_ptr.vmem [resolvable:$false] %s1179_s29 }
  0x6b   : > { %s1181_s12 = scalar_lea.vmem %s1180_s29, 256  ;;  %p1182_p12 = scmp.lt.s32.totalorder %s1484_s10, %s1180_s29 }
  0x6c   : > { %p1177_p3 = pnand %p1175_p10, %p1161_p9  ;;  %p1183_p1 = scmp.lt.s32.totalorder %s1181_s12, %s1174_s20 }
  0x6e   : > { %p1178_p7 = pneg %p1177_p3  ;;  %p1184_p2 = por %p1183_p1, %p1182_p12 }
  0x70   : > { %p1185_p4 = pnand %p1184_p2, %p1178_p7 }
  0x72   : > { %1188 = shalt.err (!%p1185_p4)
}
  0x73   : > { %1018 = dma.hbm_to_vmem [thread:$0]  (!%p1480_p11), %s1478_s23, 128, %s1484_s10, %s270_s14  }
  0x74   : > { %p1642_p0 = scmp.ne.s32.totalorder %s1636_s9, 0 }
  0x75   : > { %s1514_s8 = sand.u32 (!%p1642_p0), 1, %s1255_s25   ;;  %p1643_p9 = scmp.ne.s32.totalorder (!%p1642_p0), %s1633_s30, 0 }
  0x76   : > { %289 = sbr.rel (%p1642_p0) target bundleno = 852 (0x354), region = 48  ;;  %s748_s17 = sshll.u32 (!%p1642_p0), %s1514_s8, 3 }
  0x77   : > { %s292_s21 = scalar_lea.sflag (!%p1642_p0), [#allocation3], %s1514_s8  ;;  %s1520_s16 = scalar_lea.vmem (!%p1642_p0), [#allocation2], %s748_s17 }
  0x7d   : > { %1234 = dma.done.wait (%p1643_p9), %s292_s21, 128  }
  0x7e   : > { %1236 = vsyncadd (%p1643_p9), %s292_s21, 4294967168  ;;  %p1644_p11 = scmp.eq.s32.totalorder %s1336_s28, 0 }
  0x80   : > { %1238 = dma.done.wait (%p1644_p11), [#allocation6], 4096   ;;  %p1645_p8 = pmov %p1644_p11 }
  0x82   : > { %1240 = vsyncadd (%p1645_p8), [#allocation6], 4294963200  ;;  %p1646_p13 = pmov %p1645_p8 }
  0x83   : > { %p1647_p6 = pmov %p1645_p8 }
  0x84   : > { %1242 = dma.done.wait (%p1646_p13), [#allocation9], 2048  }
  0x85   : > { %1244 = vsyncadd (%p1647_p6), [#allocation9], 4294965248  ;;  %v1271_v0 = vmov 0.0|0.0   ;;  %vm1272_vm0 = vmmov 0   ;;  %v1273_v1 = vmov 0.0   ;;  %v339_v2 = vld [vmem:[#allocation5] sm:$0xff] }
  0x86   : > { %917 = vmatprep.subr.bf16.mxu0 %v1271_v0  ;;  %844 = vmatprep.mubr.msk.f32.mxu0 %vm1272_vm0, %v1273_v1  ;;  %v340_v3 = vld [vmem:[#allocation5 + $0x8] sm:$0xff]  ;;  %v341_v4 = vld [vmem:[#allocation5 + $0x10] sm:$0xff]  ;;  %v342_v6 = vld [vmem:[#allocation5 + $0x18] sm:$0xff]  ;;  %s758_s13 = sshll.u32 %s1336_s28, 7  ;;  %s337_s20 = scalar_lea.vmem [#allocation10], %s748_s17 }
  0x87   : > { %941 = vmatprep.subr.bf16.mxu1 %v1271_v0  ;;  %879 = vmatprep.mubr.msk.f32.mxu1 %vm1272_vm0, %v1273_v1  ;;  %v918_v5 = vpack.c.bf16 %v340_v3, %v339_v2  ;;  %v921_v7 = vpack.c.bf16 %v342_v6, %v341_v4  ;;  %v343_v8 = vld [vmem:[#allocation5 + $0x20] sm:$0xff]  ;;  %v344_v9 = vld [vmem:[#allocation5 + $0x28] sm:$0xff]  ;;  %v345_v11 = vld [vmem:[#allocation5 + $0x30] sm:$0xff]  ;;  %s640_s15 = sshll.u32 %s337_s20, 4  ;;  %s1577_s21 = scalar_lea.hbm %s1628_s7, %s758_s13  ;;  %s1579_s15 = int_to_ptr.vmem [resolvable:$true] %s640_s15 }
  0x88   : > { %v924_v10 = vpack.c.bf16 %v344_v9, %v343_v8  ;;  %v346_v12 = vld [vmem:[#allocation5 + $0x38] sm:$0xff]  ;;  %v347_v14 = vld [vmem:[#allocation5 + $0x40] sm:$0xff]  ;;  %v348_v15 = vld [vmem:[#allocation5 + $0x48] sm:$0xff]  ;;  %s1189_s30 = scalar_lea.vmem %s1579_s15, 128  ;;  %s1274_s28 = smov [#allocation10]  }
  0x89   : > { %919 = vmatpush3.bf16.msra.mxu0 %v918_v5  ;;  %v927_v13 = vpack.c.bf16 %v346_v12, %v345_v11  ;;  %v930_v16 = vpack.c.bf16 %v348_v15, %v347_v14  ;;  %v349_v17 = vld [vmem:[#allocation5 + $0x50] sm:$0xff]  ;;  %v350_v18 = vld [vmem:[#allocation5 + $0x58] sm:$0xff]  ;;  %v351_v20 = vld [vmem:[#allocation5 + $0x60] sm:$0xff]  ;;  %p1190_p10 = scmp.ne.s32.totalorder %s1579_s15, %s1189_s30  ;;  %s1193_s17 = sshll.u32 %s1274_s28, 4  ;;  %s1194_s17 = int_to_ptr.vmem [resolvable:$false] %s1193_s17 }
  0x8a   : > { %920 = vmatprep.subr.bf16.mxu0 %v1271_v0  ;;  %v933_v19 = vpack.c.bf16 %v350_v18, %v349_v17  ;;  %v352_v21 = vld [vmem:[#allocation5 + $0x68] sm:$0xff]  ;;  %v353_v23 = vld [vmem:[#allocation5 + $0x70] sm:$0xff]  ;;  %v354_v24 = vld [vmem:[#allocation5 + $0x78] sm:$0xff]  ;;  %s1195_s9 = scalar_lea.vmem %s1194_s17, 256  ;;  %p1196_p12 = scmp.lt.s32.totalorder %s1579_s15, %s1194_s17 }
  0x8b   : > { %v936_v22 = vpack.c.bf16 %v352_v21, %v351_v20  ;;  %v939_v25 = vpack.c.bf16 %v354_v24, %v353_v23  ;;  %v338_v26 = vld [vmem:[%s1520_s16] sm:$0xff]  ;;  %v439_v27 = vld [vmem:[#allocation7] sm:$0xff]  ;;  %v440_v28 = vld [vmem:[#allocation7 + $0x8] sm:$0xff]  ;;  %s627_s16 = scalar_lea.sflag [#allocation4], %s1514_s8  ;;  %p1191_p3 = pnand %p1190_p10, %p1469_p5 }
  0x8c   : > { %v942_v29 = vpack.c.bf16 %v440_v28, %v439_v27  ;;  %v441_v30 = vld [vmem:[#allocation7 + $0x10] sm:$0xff]  ;;  %v442_v31 = vld [vmem:[#allocation7 + $0x18] sm:$0xff]  ;;  %v443_v33 = vld [vmem:[#allocation7 + $0x20] sm:$0xff]  ;;  %p1197_p1 = scmp.lt.s32.totalorder %s1195_s9, %s1189_s30 }
  0x8d   : > { %922 = vmatpush3.bf16.msra.mxu0 %v921_v7  ;;  %v945_v32 = vpack.c.bf16 %v442_v31, %v441_v30  ;;  %v444_v34 = vld [vmem:[#allocation7 + $0x28] sm:$0xff]  ;;  %v445_v36 = vld [vmem:[#allocation7 + $0x30] sm:$0xff]  ;;  %v446_v37 = vld [vmem:[#allocation7 + $0x38] sm:$0xff]  ;;  %p1192_p7 = pneg %p1191_p3 }
  0x8e   : > { %923 = vmatprep.subr.bf16.mxu0 %v1271_v0  ;;  %943 = vmatpush3.bf16.msra.mxu1 %v942_v29  ;;  %v948_v35 = vpack.c.bf16 %v444_v34, %v443_v33  ;;  %v951_v38 = vpack.c.bf16 %v446_v37, %v445_v36  ;;  %v447_v39 = vld [vmem:[#allocation7 + $0x40] sm:$0xff]  ;;  %v448_v40 = vld [vmem:[#allocation7 + $0x48] sm:$0xff]  ;;  %v449_v42 = vld [vmem:[#allocation7 + $0x50] sm:$0xff]  ;;  %p1198_p2 = por %p1197_p1, %p1196_p12 }
  0x8f   : > { %944 = vmatprep.subr.bf16.mxu1 %v1271_v0  ;;  %v954_v41 = vpack.c.bf16 %v448_v40, %v447_v39  ;;  %v450_v43 = vld [vmem:[#allocation7 + $0x58] sm:$0xff]  ;;  %v451_v45 = vld [vmem:[#allocation7 + $0x60] sm:$0xff]  ;;  %v452_v46 = vld [vmem:[#allocation7 + $0x68] sm:$0xff] }
  0x90   : > { %v957_v44 = vpack.c.bf16 %v450_v43, %v449_v42  ;;  %v960_v47 = vpack.c.bf16 %v452_v46, %v451_v45  ;;  %v453_v48 = vld [vmem:[#allocation7 + $0x70] sm:$0xff]  ;;  %v454_v49 = vld [vmem:[#allocation7 + $0x78] sm:$0xff]  ;;  %v532_v51 = vld [vmem:[#allocation8] sm:$0xff]  ;;  %p1199_p4 = pnand %p1198_p2, %p1192_p7 }
  0x91   : > { %925 = vmatpush3.bf16.msra.mxu0 %v924_v10  ;;  %v963_v50 = vpack.c.bf16 %v454_v49, %v453_v48  ;;  %v533_v52 = vld [vmem:[#allocation8 + $0x8] sm:$0xff]  ;;  %v534_v53 = vld [vmem:[#allocation8 + $0x10] sm:$0xff]  ;;  %v535_v55 = vld [vmem:[#allocation8 + $0x18] sm:$0xff] }
  0x92   : > { %926 = vmatprep.subr.bf16.mxu0 %v1271_v0  ;;  %946 = vmatpush3.bf16.msra.mxu1 %v945_v32  ;;  %v966_v54 = vpack.c.bf16 %v533_v52, %v532_v51  ;;  %v969_v56 = vpack.c.bf16 %v535_v55, %v534_v53  ;;  %v536_v57 = vld [vmem:[#allocation8 + $0x20] sm:$0xff]  ;;  %v537_v58 = vld [vmem:[#allocation8 + $0x28] sm:$0xff]  ;;  %v538_v60 = vld [vmem:[#allocation8 + $0x30] sm:$0xff] }
  0x93   : > { %947 = vmatprep.subr.bf16.mxu1 %v1271_v0  ;;  %v972_v59 = vpack.c.bf16 %v537_v58, %v536_v57  ;;  %v539_v61 = vld [vmem:[#allocation8 + $0x38] sm:$0xff]  ;;  %v540_v63 = vld [vmem:[#allocation8 + $0x40] sm:$0xff]  ;;  %v542_v3 = vld [vmem:[#allocation8 + $0x50] sm:$0xff] }
  0x94   : > { %v975_v62 = vpack.c.bf16 %v539_v61, %v538_v60  ;;  %v543_v4 = vld [vmem:[#allocation8 + $0x58] sm:$0xff]  ;;  %v544_v6 = vld [vmem:[#allocation8 + $0x60] sm:$0xff]  ;;  %v545_v7 = vld [vmem:[#allocation8 + $0x68] sm:$0xff] }
  0x95   : > { %928 = vmatpush3.bf16.msra.mxu0 %v927_v13  ;;  %v981_v5 = vpack.c.bf16 %v543_v4, %v542_v3  ;;  %v984_v8 = vpack.c.bf16 %v545_v7, %v544_v6  ;;  %v753_v9 = vld [vmem:[%s1623_s2] ss:$0 sm:$0xff] }
  0x96   : > { %929 = vmatprep.subr.bf16.mxu0 %v1271_v0  ;;  %949 = vmatpush3.bf16.msra.mxu1 %v948_v35  ;;  %v546_v18 = vld [vmem:[#allocation8 + $0x70] sm:$0xff] }
  0x97   : > { %950 = vmatprep.subr.bf16.mxu1 %v1271_v0  ;;  %v755_v20 = vld [vmem:[%s1625_s4] ss:$0 sm:$0xff] }
  0x98   : > { %v756_v24 = vld [vmem:[%s1627_s6] ss:$0 sm:$0xff] }
  0x99   : > { %931 = vmatpush3.bf16.msra.mxu0 %v930_v16 }
  0x9a   : > { %932 = vmatprep.subr.bf16.mxu0 %v1271_v0  ;;  %952 = vmatpush3.bf16.msra.mxu1 %v951_v38 }
  0x9b   : > { %953 = vmatprep.subr.bf16.mxu1 %v1271_v0 }
  0x9d   : > { %934 = vmatpush3.bf16.msra.mxu0 %v933_v19  ;;  %v547_v19 = vld [vmem:[#allocation8 + $0x78] sm:$0xff] }
  0x9e   : > { %935 = vmatprep.subr.bf16.mxu0 %v1271_v0  ;;  %955 = vmatpush3.bf16.msra.mxu1 %v954_v41 }
  0x9f   : > { %956 = vmatprep.subr.bf16.mxu1 %v1271_v0 }
  0xa1   : > { %937 = vmatpush3.bf16.msra.mxu0 %v936_v22 }
  0xa2   : > { %938 = vmatprep.subr.bf16.mxu0 %v1271_v0  ;;  %958 = vmatpush3.bf16.msra.mxu1 %v957_v44 }
  0xa3   : > { %959 = vmatprep.subr.bf16.mxu1 %v1271_v0 }
  0xa5   : > { %940 = vmatpush3.bf16.msra.mxu0 %v939_v25 }
  0xa6   : > { %965 = vmatprep.subr.bf16.mxu0 %v1271_v0  ;;  %961 = vmatpush3.bf16.msra.mxu1 %v960_v47 }
  0xa7   : > { %962 = vmatprep.subr.bf16.mxu1 %v1271_v0 }
  0xa8   : > { %845 = vmatmul.mubr.f32.vlgmr.msra.gmra.mrb[0].mxu0 %v338_v26 }
  0xa9   : > { %914 = vmatprep.mubr.msk.f32.mxu0 %vm1272_vm0, %v1273_v1  ;;  %967 = vmatpush3.bf16.msra.mxu0 %v966_v54  ;;  %v541_v1 = vld [vmem:[#allocation8 + $0x48] sm:$0xff] }
  0xaa   : > { %964 = vmatpush3.bf16.msra.mxu1 %v963_v50  ;;  %968 = vmatprep.subr.bf16.mxu0 %v1271_v0  ;;  %v978_v2 = vpack.c.bf16 %v541_v1, %v540_v63 }
  0xad   : > { %970 = vmatpush3.bf16.msra.mxu0 %v969_v56 }
  0xae   : > { %971 = vmatprep.subr.bf16.mxu0 %v1271_v0 }
  0xb1   : > { %973 = vmatpush3.bf16.msra.mxu0 %v972_v59 }
  0xb2   : > { %974 = vmatprep.subr.bf16.mxu0 %v1271_v0 }
  0xb5   : > { %976 = vmatpush3.bf16.msra.mxu0 %v975_v62 }
  0xb6   : > { %977 = vmatprep.subr.bf16.mxu0 %v1271_v0 }
  0xb9   : > { %979 = vmatpush3.bf16.msra.mxu0 %v978_v2 }
  0xba   : > { %980 = vmatprep.subr.bf16.mxu0 %v1271_v0 }
  0xbd   : > { %982 = vmatpush3.bf16.msra.mxu0 %v981_v5 }
  0xbe   : > { %983 = vmatprep.subr.bf16.mxu0 %v1271_v0 }
  0xc1   : > { %985 = vmatpush3.bf16.msra.mxu0 %v984_v8 }
  0xc2   : > { %986 = vmatprep.subr.bf16.mxu0 %v1271_v0  ;;  %v987_v0 = vpack.c.bf16 %v547_v19, %v546_v18 }
  0xc5   : > { %988 = vmatpush3.bf16.msra.mxu0 %v987_v0 }
 0x17b   : > { %v428_v10 = vpop.f32.mrb[0].mxu0 }
 0x17c   : > { %v429_v11 = vadd.f32 %v753_v9, %v428_v10  ;;  %v846_v12 = vpop.f32.mrb[1].mxu0 }
 0x17e   : > { %v754_v13 = vmul.f32 -1.442695, %v429_v11 }
 0x180   : > { %1071 = vpow2.f32 %v754_v13 }
 0x18a   : > { %v1072_v14 = vpop.eup %1071 }
 0x18b   : > { %v435_v15 = vadd.f32 1.0, %v1072_v14 }
 0x18d   : > { %1073 = vrcp.f32 %v435_v15 }
 0x197   : > { %v1074_v16 = vpop.eup %1073 }
 0x198   : > { %v438_v17 = vmul.f32 %v1074_v16, %v429_v11 }
 0x19a   : > { %880 = vmatmul.mubr.f32.vlgmr.msra.gmra.mrb[0].mxu1 %v438_v17 }
 0x26d   : > { %v528_v21 = vpop.f32.mrb[0].mxu1 }
 0x26e   : > { %v529_v22 = vadd.f32 %v755_v20, %v528_v21  ;;  %v881_v23 = vpop.f32.mrb[1].mxu1 }
 0x270   : > { %915 = vmatmul.mubr.f32.vlgmr.msra.gmra.mrb[2].mxu0 %v529_v22 }
 0x343   : > { %v621_v25 = vpop.f32.mrb[2].mxu0 }
 0x344   : > { %v622_v26 = vadd.f32 %v756_v24, %v621_v25  ;;  %v916_v27 = vpop.f32.mrb[3].mxu0 }
 0x346   : > { %625 = vst [vmem:[%s337_s20] sm:$0xff] %v622_v26 }
 0x347   : > { %1202 = shalt.err (!%p1199_p4)
}
 0x348   : > { %s1203_s8 = scalar_lea.hbm %s1577_s21, 128  ;;  %s1207_s11 = scalar_lea.hbm %s1628_s7, 256 }
 0x349   : > { %p1204_p0 = scmp.ne.s32.totalorder %s1577_s21, %s1203_s8  ;;  %p1208_p8 = scmp.lt.u32.totalorder %s1577_s21, %s1628_s7 }
 0x34a   : > { %p1209_p13 = scmp.lt.u32.totalorder %s1207_s11, %s1203_s8  ;;  %p1211_p10 = scmp.lt.u32.totalorder %s1203_s8, %s1577_s21 }
 0x34b   : > { %p1205_p9 = pnand %p1204_p0, %p1469_p5 }
 0x34c   : > { %p1210_p6 = por %p1209_p13, %p1208_p8 }
 0x34d   : > { %p1206_p11 = pneg %p1205_p9 }
 0x34e   : > { %p1212_p3 = por %p1211_p10, %p1210_p6 }
 0x350   : > { %p1213_p7 = pnand %p1212_p3, %p1206_p11 }
 0x352   : > { %1216 = shalt.err (!%p1213_p7)
}
 0x353   : > { %1003 = dma.vmem_to_hbm [thread:$0]  (%p1469_p5), %s1579_s15, 128, %s1577_s21, %s627_s16  }
 0x354 PF: > { %s1648_s20 = sld [smem:[#allocation15_spill]]  ;;  %s652_s29 = sand.u32 1, %s1251_s24  }
 0x355   : > { %p1650_p1 = scmp.ge.s32.totalorder %s1263_s27, 2  ;;  %s653_s12 = scalar_lea.sflag [#allocation4], %s652_s29 }
 0x35a   : > { %p1649_p12 = scmp.ne.s32.totalorder %s1648_s20, 0 }
 0x35c   : > { %p1020_p2 = pnand %p1650_p1, %p1649_p12 }
 0x35e   : > { %1246 = dma.done.wait (!%p1020_p2), %s653_s12, 128  }
 0x35f   : > { %1248 = vsyncadd (!%p1020_p2), %s653_s12, 4294967168  ;;  %p22_p4 = scmp.ge.s32.totalorder %s1455_s22, 4   ;;  %s1651_s24 = smov %s1255_s25 }
 0x360   : > { %s1652_s25 = smov %s1259_s26  ;;  %s1653_s26 = smov %s1465_s18 }
 0x361   : > { %s1654_s27 = smov %s1455_s22  ;;  %24 = sbr.rel (!%p22_p4) target bundleno = 7 (0x7), region = 105 }
 0x368   :  { %658 = vsyncpa [#allocation3], 1 }
 0x369   :  { %660 = vsyncpa [#allocation3 + $0x1], 1 }
 0x36a   :  { %661 = vsyncpa [#allocation6], 1 }
 0x36b   :  { %662 = vsyncpa [#allocation9], 1 }
 0x36c   :  { %663 = vsyncpa [#allocation4], 1 }
 0x36d   :  { %665 = vsyncpa [#allocation4 + $0x1], 1 }

</bundles_post_ra>
